<compile_context>
chip_gen: v6e
topology: v6e:2x2x1
jax: 0.10.0
libtpu: 0.0.40
codegen_flags: <defaults>
</compile_context>

<pallas_src>
import jax
import jax.numpy as jnp
from jax.experimental import pallas as pl
from jax.experimental.pallas import tpu as pltpu

LANE = 128        # lane width (last dim)
SUBLANE_F32 = 8   # f32 sublane packing (second-last dim)


# ----------------------------------------------------------------------------
# Kernels
# ----------------------------------------------------------------------------
def mlp_fused_kernel(x_ref, w1_ref, b1_ref, w2_ref, b2_ref, o_ref):
    """Whole hidden dim in one shot; weights VMEM-resident."""
    # Cast x to bf16 in-kernel (VPU) instead of a separate wrapper pass.
    xb = x_ref[...].astype(w1_ref.dtype)
    # fc1 on MXU: bf16 x bf16 -> f32 accumulate.
    h = jnp.dot(xb, w1_ref[...], preferred_element_type=jnp.float32)
    # Bias + ReLU epilogue in f32 (VPU).
    h = jnp.maximum(h + b1_ref[...], 0.0)
    # fc2 on MXU.
    y = jnp.dot(h.astype(w2_ref.dtype), w2_ref[...],
                preferred_element_type=jnp.float32)
    o_ref[...] = (y + b2_ref[...]).astype(o_ref.dtype)


def mlp_chunked_kernel(x_ref, w1_ref, b1_ref, w2_ref, b2_ref, o_ref, acc_ref):
    """Hidden dim chunked over the last ('arbitrary') grid axis; exact because
    ReLU is elementwise per hidden unit."""
    k = pl.program_id(1)

    @pl.when(k == 0)
    def _():
        acc_ref[...] = jnp.zeros_like(acc_ref)

    xb = x_ref[...].astype(w1_ref.dtype)
    h = jnp.dot(xb, w1_ref[...], preferred_element_type=jnp.float32)
    h = jnp.maximum(h + b1_ref[...], 0.0)
    acc_ref[...] += jnp.dot(h.astype(w2_ref.dtype), w2_ref[...],
                            preferred_element_type=jnp.float32)

    @pl.when(k == pl.num_programs(1) - 1)
    def _():
        o_ref[...] = (acc_ref[...] + b2_ref[...]).astype(o_ref.dtype)


# ----------------------------------------------------------------------------
# Helpers
# ----------------------------------------------------------------------------
def _round_up(n, m):
    return ((n + m - 1) // m) * m


def _pad_axis(a, axis, new_size):
    pad = new_size - a.shape[axis]
    if pad <= 0:
        return a
    widths = [(0, 0)] * a.ndim
    widths[axis] = (0, pad)
    return jnp.pad(a, widths)


def _vmem_capacity_bytes():
    """Physical VMEM of the current generation; conservative fallback."""
    try:
        info = pltpu.get_tpu_info()
        cap = getattr(info, "vmem_capacity_bytes", None)
        if cap:
            return int(cap)
    except Exception:
        pass
    return 64 * 1024 * 1024  # v7x-sized (smallest modern) fallback


def _const_spec(shape):
    """BlockSpec for a grid-invariant (resident) block.

    Single-buffered (pl.Buffered(1)) when available: constant-index blocks
    don't need double buffering, halving their VMEM footprint."""
    kwargs = {}
    if hasattr(pl, "Buffered"):
        kwargs["pipeline_mode"] = pl.Buffered(1)
    return pl.BlockSpec(shape, lambda *args: (0,) * len(shape), **kwargs)


# ----------------------------------------------------------------------------
# Parameter preparation (once per model, NOT per forward)
# ----------------------------------------------------------------------------
def init_params(key, input_size, hidden_size, output_size, dtype=jnp.float32):
    """Deterministic init mimicking nn.Linear (uniform +/- 1/sqrt(fan_in))."""
    k1, k2, k3, k4 = jax.random.split(key, 4)
    bound1 = 1.0 / (input_size ** 0.5)
    bound2 = 1.0 / (hidden_size ** 0.5)
    w1 = jax.random.uniform(k1, (input_size, hidden_size), dtype,
                            minval=-bound1, maxval=bound1)
    b1 = jax.random.uniform(k2, (1, hidden_size), dtype,
                            minval=-bound1, maxval=bound1)
    w2 = jax.random.uniform(k3, (hidden_size, output_size), dtype,
                            minval=-bound2, maxval=bound2)
    b2 = jax.random.uniform(k4, (1, output_size), dtype,
                            minval=-bound2, maxval=bound2)
    return w1, b1, w2, b2


def prepare_params(w1, b1, w2, b2, *, compute_dtype=jnp.bfloat16):
    """One-time lane-padding + cast of parameters.

    hidden and output dims are zero-padded to multiples of 128 so both matmuls
    are lane-dense (unmasked vregs, full MXU columns); zero pad columns/rows
    contribute zero to the result, so semantics are unchanged."""
    hidden = w1.shape[1]
    out_size = w2.shape[1]
    hid_pad = _round_up(hidden, LANE)
    out_pad = _round_up(out_size, LANE)
    w1_p = _pad_axis(w1, 1, hid_pad).astype(compute_dtype)
    b1_p = _pad_axis(b1.reshape(1, -1), 1, hid_pad).astype(jnp.float32)
    w2_p = _pad_axis(_pad_axis(w2, 0, hid_pad), 1, out_pad).astype(compute_dtype)
    b2_p = _pad_axis(b2.reshape(1, -1), 1, out_pad).astype(jnp.float32)
    return (w1_p, b1_p, w2_p, b2_p), out_size


# ----------------------------------------------------------------------------
# Forward
# ----------------------------------------------------------------------------
def simple_nn_forward(x, params, out_size, *, block_b=512, hidden_chunk=None):
    """x: (B, in) f32; params from prepare_params (pre-padded, pre-cast)."""
    w1_p, b1_p, w2_p, b2_p = params
    B, in_size = x.shape
    hid_pad = w1_p.shape[1]
    out_pad = w2_p.shape[1]
    out_dtype = x.dtype
    out_isz = jnp.dtype(out_dtype).itemsize

    vmem_cap = _vmem_capacity_bytes()
    vmem_budget = int(vmem_cap * 0.7)          # headroom for pipeline/scratch
    vmem_limit = int(vmem_cap - vmem_cap // 8) # explicit scoped limit

    # ---- batch tile -------------------------------------------------------
    tb = min(_round_up(block_b, SUBLANE_F32), _round_up(B, SUBLANE_F32))
    # Give the "parallel" batch axis >= 2 grid steps when the batch allows so
    # v7x's 2 TensorCores both get work (one extra ~0.35us step elsewhere).
    if B >= 2 * SUBLANE_F32:
        tb = min(tb, _round_up(pl.cdiv(B, 2), SUBLANE_F32))

    # ---- VMEM footprint estimates (bytes) ---------------------------------
    def fused_vmem(tb_):
        resident = (in_size * hid_pad + hid_pad * out_pad) * 2 \
                   + (hid_pad + out_pad) * 4                      # bf16 W + f32 b
        bufs = 2 * tb_ * in_size * 4 + 2 * tb_ * out_pad * out_isz
        interm = tb_ * (in_size * 2 + hid_pad * 6 + out_pad * 4)  # casts + h + y
        return resident + bufs + interm

    def chunked_vmem(tb_, tk_):
        per_chunk = 2 * ((in_size * tk_ + tk_ * out_pad) * 2 + tk_ * 4)
        bufs = 2 * tb_ * in_size * 4 + 2 * tb_ * out_pad * out_isz
        acc = tb_ * out_pad * 4
        interm = tb_ * (in_size * 2 + tk_ * 6 + out_pad * 4)
        return out_pad * 4 + per_chunk + bufs + acc + interm

    use_chunked = hidden_chunk is not None
    if not use_chunked:
        while tb > SUBLANE_F32 and fused_vmem(tb) > vmem_budget:
            tb = max(SUBLANE_F32, _round_up(tb // 2, SUBLANE_F32))
        if fused_vmem(tb) > vmem_budget:
            use_chunked = True

    tk = None
    if use_chunked:
        tk = hidden_chunk if hidden_chunk is not None else 4 * LANE
        tk = min(_round_up(tk, LANE), hid_pad)
        while hid_pad % tk != 0:     # hid_pad is a multiple of LANE -> terminates
            tk -= LANE
        while tb > SUBLANE_F32 and chunked_vmem(tb, tk) > vmem_budget:
            tb = max(SUBLANE_F32, _round_up(tb // 2, SUBLANE_F32))

    b_pad = _round_up(B, tb)
    x_in = _pad_axis(x, 0, b_pad)    # no-op when B is already a tb multiple

    # ---- scheduler hint ----------------------------------------------------
    flops = 2 * b_pad * (in_size * hid_pad + hid_pad * out_pad)
    bytes_accessed = (x_in.size * jnp.dtype(x_in.dtype).itemsize
                      + w1_p.size * jnp.dtype(w1_p.dtype).itemsize
                      + w2_p.size * jnp.dtype(w2_p.dtype).itemsize
                      + (hid_pad + out_pad) * 4
                      + b_pad * out_pad * out_isz)
    cost = pl.CostEstimate(flops=flops, transcendentals=0,
                           bytes_accessed=bytes_accessed)

    if not use_chunked:
        out = pl.pallas_call(
            mlp_fused_kernel,
            out_shape=jax.ShapeDtypeStruct((b_pad, out_pad), out_dtype),
            grid=(b_pad // tb,),
            in_specs=[
                pl.BlockSpec((tb, in_size), lambda i: (i, 0)),   # x tile (f32)
                _const_spec((in_size, hid_pad)),                 # W1 resident
                _const_spec((1, hid_pad)),                       # b1 resident
                _const_spec((hid_pad, out_pad)),                 # W2 resident
                _const_spec((1, out_pad)),                       # b2 resident
            ],
            out_specs=pl.BlockSpec((tb, out_pad), lambda i: (i, 0)),
            compiler_params=pltpu.CompilerParams(
                dimension_semantics=("parallel",),
                vmem_limit_bytes=vmem_limit),
            cost_estimate=cost,
        )(x_in, w1_p, b1_p, w2_p, b2_p)
    else:
        out = pl.pallas_call(
            mlp_chunked_kernel,
            out_shape=jax.ShapeDtypeStruct((b_pad, out_pad), out_dtype),
            grid=(b_pad // tb, hid_pad // tk),
            in_specs=[
                pl.BlockSpec((tb, in_size), lambda i, k: (i, 0)),  # x tile
                pl.BlockSpec((in_size, tk), lambda i, k: (0, k)),  # W1 chunk
                pl.BlockSpec((1, tk), lambda i, k: (0, k)),        # b1 chunk
                pl.BlockSpec((tk, out_pad), lambda i, k: (k, 0)),  # W2 chunk
                _const_spec((1, out_pad)),                         # b2 resident
            ],
            out_specs=pl.BlockSpec((tb, out_pad), lambda i, k: (i, 0)),
            scratch_shapes=[pltpu.VMEM((tb, out_pad), jnp.float32)],
            compiler_params=pltpu.CompilerParams(
                dimension_semantics=("parallel", "arbitrary"),
                vmem_limit_bytes=vmem_limit),
            cost_estimate=cost,
        )(x_in, w1_p, b1_p, w2_p, b2_p)

    # Only pay for the slice when padding actually happened.
    if b_pad != B or out_pad != out_size:
        out = out[:B, :out_size]
    return out


# ----------------------------------------------------------------------------
# Test
# ----------------------------------------------------------------------------
if __name__ == "__main__":
    # TODO(synk): learnable=True path (LearnableBSplineActivation) is not
    # defined in the provided source; this implements the default F.relu path.
    batch, input_size, hidden_size, output_size = 8, 32, 64, 16

    key = jax.random.PRNGKey(0)
    kx, kp = jax.random.split(key)
    x = jax.random.normal(kx, (batch, input_size), jnp.float32)
    w1, b1, w2, b2 = init_params(kp, input_size, hidden_size, output_size)
    params, out_size = prepare_params(w1, b1, w2, b2)

    out = simple_nn_forward(x, params, out_size)
    jax.block_until_ready(out)
    assert out.shape == (batch, output_size)

    def ref_matched(x_, w1_, b1_, w2_, b2_):
        # Matched-precision reference (same bf16 operands, f32 accumulation).
        xb, w1b, w2b = (a.astype(jnp.bfloat16) for a in (x_, w1_, w2_))
        h = jnp.maximum(
            jnp.dot(xb, w1b, preferred_element_type=jnp.float32) + b1_, 0.0)
        return jnp.dot(h.astype(jnp.bfloat16), w2b,
                       preferred_element_type=jnp.float32) + b2_

    ref_bf16 = ref_matched(x, w1, b1, w2, b2)
    assert jnp.allclose(out, ref_bf16, atol=2e-3, rtol=2e-3)

    # Loose check against the full-f32 reference (module semantics).
    ref_f32 = jnp.maximum(x @ w1 + b1, 0.0) @ w2 + b2
    assert jnp.allclose(out, ref_f32, atol=5e-2, rtol=5e-2)

    # Exercise the hidden-chunk reduction path (used for large hidden sizes).
    hidden2 = 256
    w1c, b1c, w2c, b2c = init_params(jax.random.PRNGKey(1), input_size,
                                     hidden2, output_size)
    params2, out_size2 = prepare_params(w1c, b1c, w2c, b2c)
    out2 = simple_nn_forward(x, params2, out_size2, hidden_chunk=128)
    jax.block_until_ready(out2)
    assert out2.shape == (batch, output_size)
    ref2 = ref_matched(x, w1c, b1c, w2c, b2c)
    assert jnp.allclose(out2, ref2, atol=2e-3, rtol=2e-3)

    print("KERNEL_OK")
</pallas_src>

<mosaic_0001>
module attributes {stable_mosaic.version = 11 : i64} {
  func.func @mlp_fused_kernel(%arg0: i32, %arg1: memref<8x32xf32, #tpu.memory_space<vmem>>, %arg2: memref<32x128xbf16, #tpu.memory_space<vmem>>, %arg3: memref<1x128xf32, #tpu.memory_space<vmem>>, %arg4: memref<128x128xbf16, #tpu.memory_space<vmem>>, %arg5: memref<1x128xf32, #tpu.memory_space<vmem>>, %arg6: memref<8x128xf32, #tpu.memory_space<vmem>>) attributes {dimension_semantics = [#tpu.dimension_semantics<parallel>], iteration_bounds = array<i64: 1>, scalar_prefetch = 0 : i64, scratch_operands = 0 : i64, tpu.core_type = #tpu.core_type<tc>, window_params = [{transform_indices = @transform_0, window_bounds = array<i64: 8, 32>}, {pipeline_mode = #tpu.pipeline_mode<synchronous>, transform_indices = @transform_1, window_bounds = array<i64: 32, 128>}, {pipeline_mode = #tpu.pipeline_mode<synchronous>, transform_indices = @transform_2, window_bounds = array<i64: 1, 128>}, {pipeline_mode = #tpu.pipeline_mode<synchronous>, transform_indices = @transform_3, window_bounds = array<i64: 128, 128>}, {pipeline_mode = #tpu.pipeline_mode<synchronous>, transform_indices = @transform_4, window_bounds = array<i64: 1, 128>}, {transform_indices = @transform_5, window_bounds = array<i64: 8, 128>}]} {
    %c0 = arith.constant 0 : index
    %c0_0 = arith.constant 0 : index
    %0 = vector.load %arg1[%c0, %c0_0] : memref<8x32xf32, #tpu.memory_space<vmem>>, vector<8x32xf32>
    %1 = arith.truncf %0 : vector<8x32xf32> to vector<8x32xbf16>
    %c0_1 = arith.constant 0 : index
    %c0_2 = arith.constant 0 : index
    %2 = vector.load %arg2[%c0_1, %c0_2] : memref<32x128xbf16, #tpu.memory_space<vmem>>, vector<32x128xbf16>
    %cst = arith.constant dense<0.000000e+00> : vector<8x128xf32>
    %3 = tpu.matmul %1, %2, %cst {dimension_numbers = #tpu.dot_dimension_numbers<[1], [0], [0], [1], [0, 0, 1, 1], [], []>} : vector<8x32xbf16>, vector<32x128xbf16>, vector<8x128xf32> -> vector<8x128xf32>
    %c0_3 = arith.constant 0 : index
    %c0_4 = arith.constant 0 : index
    %4 = vector.load %arg3[%c0_3, %c0_4] : memref<1x128xf32, #tpu.memory_space<vmem>>, vector<1x128xf32>
    %5 = vector.broadcast %4 : vector<1x128xf32> to vector<8x128xf32>
    %6 = arith.addf %3, %5 : vector<8x128xf32>
    %cst_5 = arith.constant 0.000000e+00 : f32
    %7 = vector.broadcast %cst_5 : f32 to vector<8x128xf32>
    %8 = arith.maximumf %6, %7 : vector<8x128xf32>
    %9 = arith.truncf %8 : vector<8x128xf32> to vector<8x128xbf16>
    %c0_6 = arith.constant 0 : index
    %c0_7 = arith.constant 0 : index
    %10 = vector.load %arg4[%c0_6, %c0_7] : memref<128x128xbf16, #tpu.memory_space<vmem>>, vector<128x128xbf16>
    %cst_8 = arith.constant dense<0.000000e+00> : vector<8x128xf32>
    %11 = tpu.matmul %9, %10, %cst_8 {dimension_numbers = #tpu.dot_dimension_numbers<[1], [0], [0], [1], [0, 0, 1, 1], [], []>} : vector<8x128xbf16>, vector<128x128xbf16>, vector<8x128xf32> -> vector<8x128xf32>
    %c0_9 = arith.constant 0 : index
    %c0_10 = arith.constant 0 : index
    %12 = vector.load %arg5[%c0_9, %c0_10] : memref<1x128xf32, #tpu.memory_space<vmem>>, vector<1x128xf32>
    %13 = vector.broadcast %12 : vector<1x128xf32> to vector<8x128xf32>
    %14 = arith.addf %11, %13 : vector<8x128xf32>
    %c0_11 = arith.constant 0 : index
    %c0_12 = arith.constant 0 : index
    %15 = vector.load %arg6[%c0_11, %c0_12] : memref<8x128xf32, #tpu.memory_space<vmem>>, vector<8x128xf32>
    tpu.vector_store %arg6[%c0_11, %c0_12], %14 {strides = array<i32>} : memref<8x128xf32, #tpu.memory_space<vmem>>, vector<8x128xf32>,
    return
  }
  func.func @transform_0(%arg0: i32) -> (i32, i32) {
    %c0_i32 = arith.constant 0 : i32
    %c0_i32_0 = arith.constant 0 : i32
    return %arg0, %c0_i32 : i32, i32
  }
  func.func @transform_1(%arg0: i32) -> (i32, i32) {
    %c0_i32 = arith.constant 0 : i32
    %c0_i32_0 = arith.constant 0 : i32
    %c0_i32_1 = arith.constant 0 : i32
    return %c0_i32, %c0_i32_0 : i32, i32
  }
  func.func @transform_2(%arg0: i32) -> (i32, i32) {
    %c0_i32 = arith.constant 0 : i32
    %c0_i32_0 = arith.constant 0 : i32
    %c0_i32_1 = arith.constant 0 : i32
    return %c0_i32, %c0_i32_0 : i32, i32
  }
  func.func @transform_3(%arg0: i32) -> (i32, i32) {
    %c0_i32 = arith.constant 0 : i32
    %c0_i32_0 = arith.constant 0 : i32
    %c0_i32_1 = arith.constant 0 : i32
    return %c0_i32, %c0_i32_0 : i32, i32
  }
  func.func @transform_4(%arg0: i32) -> (i32, i32) {
    %c0_i32 = arith.constant 0 : i32
    %c0_i32_0 = arith.constant 0 : i32
    %c0_i32_1 = arith.constant 0 : i32
    return %c0_i32, %c0_i32_0 : i32, i32
  }
  func.func @transform_5(%arg0: i32) -> (i32, i32) {
    %c0_i32 = arith.constant 0 : i32
    %c0_i32_0 = arith.constant 0 : i32
    return %arg0, %c0_i32 : i32, i32
  }
}

</mosaic_0001>

<bundles_post_ra>
// kernel: tpu_custom_call.1
= control target key start
LH: loop header
LB: loop body
LE: loop exit
PB: predicated region body
PF: predicated region fallthrough
CT: control target
= control target key end

     0   :  { %10 = vsyncpa [#allocation3], 0  ;;  %s473_s0 = inlined_call_operand.hbm [shape: f32[8,32], index: 0, kind: input, shape index: {}]   ;;  %s474_s1 = inlined_call_operand.hbm [shape: bf16[32,128], index: 1, kind: input, shape index: {}]   ;;  %s475_s2 = inlined_call_operand.vmem [shape: f32[1,128], index: 2, kind: input, shape index: {}]   ;;  %s476_s3 = inlined_call_operand.hbm [shape: bf16[128,128], index: 3, kind: input, shape index: {}]   ;;  %s477_s4 = inlined_call_operand.vmem [shape: f32[1,128], index: 4, kind: input, shape index: {}]   ;;  %s478_s5 = inlined_call_operand.hbm [shape: f32[8,128], index: 5, kind: output, shape index: {}]  }
   0x1   :  { %11 = vsyncpa [#allocation6], 0 }
   0x2   :  { %12 = vsyncpa [#allocation4], 0  ;;  %s417_s18 = smov [#allocation5]  }
   0x3   :  { %s28_s19 = sshll.u32 %s417_s18, 4  ;;  %s29_s19 = int_to_ptr.vmem [resolvable:$true] %s28_s19 }
   0x4   :  { %s339_s20 = scalar_lea.vmem %s29_s19, 256  ;;  %p344_p1 = scmp.lt.s32.totalorder %s29_s19, %s29_s19 }
   0x5   :  { %p340_p0 = scmp.ne.s32.totalorder %s29_s19, %s339_s20  ;;  %p345_p2 = scmp.lt.s32.totalorder %s339_s20, %s339_s20 }
   0x7   :  { %p346_p3 = por %p345_p2, %p344_p1 }
   0x9   :  { %p347_p4 = pnand %p346_p3, %p340_p0 }
   0xb   :  { %350 = shalt.err (!%p347_p4)
}
   0xc   :  { %s418_s21 = smov 64   ;;  %s419_s22 = smov 4  }
   0xd   :  { %34 = dma.hbm_to_vmem [thread:$0]  %s474_s1, 256, %s29_s19, [#allocation6], %s418_s21, %s418_s21, %s419_s22  }
   0xe   :  { %s420_s25 = smov [#allocation2]   ;;  %s421_s27 = smov [#allocation7]  }
   0xf   :  { %s19_s26 = sshll.u32 %s420_s25, 4  ;;  %s42_s28 = sshll.u32 %s421_s27, 4  ;;  %s20_s26 = int_to_ptr.vmem [resolvable:$true] %s19_s26  ;;  %s43_s28 = int_to_ptr.vmem [resolvable:$true] %s42_s28 }
  0x10   :  { %s359_s29 = scalar_lea.vmem %s20_s26, 128  ;;  %p364_p6 = scmp.lt.s32.totalorder %s20_s26, %s20_s26 }
  0x11   :  { %p360_p5 = scmp.ne.s32.totalorder %s20_s26, %s359_s29  ;;  %p365_p7 = scmp.lt.s32.totalorder %s359_s29, %s359_s29 }
  0x13   :  { %p366_p8 = por %p365_p7, %p364_p6 }
  0x15   :  { %p367_p9 = pnand %p366_p8, %p360_p5 }
  0x17   :  { %370 = shalt.err (!%p367_p9)
}
  0x18   :  { %22 = dma.hbm_to_vmem [thread:$0]  %s473_s0, 128, %s20_s26, [#allocation3]  }
  0x19   :  { %s379_s7 = scalar_lea.vmem %s43_s28, 1024  ;;  %p384_p11 = scmp.lt.s32.totalorder %s43_s28, %s43_s28 }
  0x1a   :  { %p380_p10 = scmp.ne.s32.totalorder %s43_s28, %s379_s7  ;;  %p385_p12 = scmp.lt.s32.totalorder %s379_s7, %s379_s7 }
  0x1c   :  { %p386_p13 = por %p385_p12, %p384_p11 }
  0x1e   :  { %p387_p0 = pnand %p386_p13, %p380_p10 }
  0x20   :  { %390 = shalt.err (!%p387_p0)
}
  0x21   :  { %48 = dma.hbm_to_vmem [thread:$0]  %s476_s3, 1024, %s43_s28, [#allocation6], %s418_s21, %s418_s21, %s419_s22  }
  0x22   :  { %411 = dma.done.wait [#allocation3], 128  }
  0x23   :  { %412 = vsyncadd [#allocation3], 4294967168 }
  0x24   :  { %413 = dma.done.wait [#allocation6], 1280  }
  0x25   :  { %414 = vsyncadd [#allocation6], 4294966016  ;;  %v422_v0 = vmov 0.0   ;;  %vm423_vm0 = vmmov 0   ;;  %v321_v1 = vld [vmem:[#allocation5 + $0x8] sm:$0xff]   ;;  %v322_v2 = vld [vmem:[#allocation5] sm:$0xff]  }
  0x26   :  { %285 = vmatprep.subr.bf16.mxu0 %v422_v0  ;;  %289 = vmatprep.mubr.msk.bf16.mxu0 %vm423_vm0, %v422_v0  ;;  %v61_v3 = vld [vmem:[#allocation2] sm:$0xff]  ;;  %v323_v4 = vld [vmem:[#allocation7 + $0x38] sm:$0xff]   ;;  %v324_v6 = vld [vmem:[#allocation7 + $0x30] sm:$0xff]   ;;  %vm86_vm1 = vcmask 261120   ;;  %s424_s11 = smov [#allocation8]  }
  0x27   :  { %293 = vmatprep.subr.bf16.mxu1 %v422_v0  ;;  %309 = vmatprep.mubr.msk.bf16.mxu1 %vm423_vm0, %v422_v0  ;;  %v62_v5 = vpack.c.bf16 %v61_v3, %v61_v3  ;;  %v325_v7 = vld [vmem:[#allocation7 + $0x28] sm:$0xff]   ;;  %v326_v8 = vld [vmem:[#allocation7 + $0x20] sm:$0xff]   ;;  %v327_v9 = vld [vmem:[#allocation7 + $0x18] sm:$0xff]   ;;  %s250_s12 = sshll.u32 %s424_s11, 4  ;;  %s251_s12 = int_to_ptr.vmem [resolvable:$true] %s250_s12 }
  0x28   :  { %286 = vmatpush3.bf16.msra.mxu0 %v321_v1  ;;  %294 = vmatpush3.bf16.msra.mxu1 %v323_v4  ;;  %v328_v10 = vld [vmem:[#allocation7 + $0x10] sm:$0xff]   ;;  %v329_v11 = vld [vmem:[#allocation7 + $0x8] sm:$0xff]   ;;  %v330_v12 = vld [vmem:[#allocation7] sm:$0xff]   ;;  %p396_p2 = scmp.lt.s32.totalorder %s251_s12, %s251_s12 }
  0x29   :  { %287 = vmatprep.subr.bf16.mxu0 %v422_v0  ;;  %295 = vmatprep.subr.bf16.mxu1 %v422_v0  ;;  %v260_v13 = vld [vmem:[%s475_s2] ss:$0 sm:$0xff]  ;;  %s391_s2 = scalar_lea.vmem %s251_s12, 128 }
  0x2a   :  { %v264_v21 = vld [vmem:[%s477_s4] ss:$0 sm:$0xff]  ;;  %p392_p1 = scmp.ne.s32.totalorder %s251_s12, %s391_s2  ;;  %p397_p3 = scmp.lt.s32.totalorder %s391_s2, %s391_s2 }
  0x2c   :  { %288 = vmatpush3.bf16.msra.mxu0 %v322_v2  ;;  %296 = vmatpush3.bf16.msra.mxu1 %v324_v6  ;;  %p398_p4 = por %p397_p3, %p396_p2 }
  0x2d   :  { %297 = vmatprep.subr.bf16.mxu1 %v422_v0 }
  0x2e   :  { %p399_p5 = pnand %p398_p4, %p392_p1 }
  0x2f   :  { %290 = vmatmul.mubr.msk.bf16.vlgmr.msra.gmra.mxu0 %vm86_vm1, %v62_v5 }
  0x30   :  { %298 = vmatpush3.bf16.msra.mxu1 %v325_v7 }
  0x31   :  { %299 = vmatprep.subr.bf16.mxu1 %v422_v0 }
  0x34   :  { %300 = vmatpush3.bf16.msra.mxu1 %v326_v8 }
  0x35   :  { %301 = vmatprep.subr.bf16.mxu1 %v422_v0 }
  0x38   :  { %302 = vmatpush3.bf16.msra.mxu1 %v327_v9 }
  0x39   :  { %303 = vmatprep.subr.bf16.mxu1 %v422_v0 }
  0x3c   :  { %304 = vmatpush3.bf16.msra.mxu1 %v328_v10 }
  0x3d   :  { %305 = vmatprep.subr.bf16.mxu1 %v422_v0 }
  0x40   :  { %306 = vmatpush3.bf16.msra.mxu1 %v329_v11 }
  0x41   :  { %307 = vmatprep.subr.bf16.mxu1 %v422_v0 }
  0x44   :  { %308 = vmatpush3.bf16.msra.mxu1 %v330_v12 }
  0xef   :  { %v124_v14 = vpop.f32.mrf.mxu0 }
  0xf0   :  { %v125_v15 = vadd.f32 %v260_v13, %v124_v14 }
  0xf1   :  { %v291_v16 = vpop.f32.mrf.mxu0 }
  0xf2   :  { %v130_v17 = vmax.f32 %v125_v15, 0.0 }
  0xf3   :  { %v127_v18 = vpop.f32.mrf.mxu0 }
  0xf4   :  { %v131_v19 = vpack.c.bf16 %v130_v17, %v130_v17 }
  0xf5   :  { %v292_v20 = vpop.f32.mrf.mxu0 }
  0xf6   :  { %310 = vmatmul.mubr.bf16.vlgmr.msra.gmra.mxu1 %v131_v19 }
 0x1b6   :  { %v237_v22 = vpop.f32.mrf.mxu1 }
 0x1b7   :  { %v238_v23 = vadd.f32 %v264_v21, %v237_v22 }
 0x1b8   :  { %v311_v24 = vpop.f32.mrf.mxu1 }
 0x1b9   :  { %243 = vst [vmem:[#allocation8] sm:$0xff] %v238_v23 }
 0x1ba   :  { %v240_v25 = vpop.f32.mrf.mxu1 }
 0x1bb   :  { %402 = shalt.err (!%p399_p5)
}
 0x1bc   :  { %253 = dma.vmem_to_hbm [thread:$0]  %s251_s12, 128, %s478_s5, [#allocation4]   ;;  %v312_v26 = vpop.f32.mrf.mxu1 }
 0x1bd   :  { %415 = dma.done.wait [#allocation4], 128  }
 0x1be   :  { %416 = vsyncadd [#allocation4], 4294967168 }
 0x1bf   :  { %257 = vsyncpa [#allocation3], 1 }
 0x1c0   :  { %258 = vsyncpa [#allocation6], 1 }
 0x1c1   :  { %259 = vsyncpa [#allocation4], 1 }

</bundles_post_ra>
